<compile_context>
chip_gen: v7x
topology: tpu7x:2x2x1
jax: 0.10.0
libtpu: 0.0.40
codegen_flags: <defaults>
</compile_context>

<pallas_src>
import functools

import jax
import jax.numpy as jnp
from jax import lax
from jax.experimental import pallas as pl
from jax.experimental.pallas import tpu as pltpu

GAMMA = 1.5
ALPHA = 0.25

_LANES = 128
_SUBLANES = 8
_MAX_TM = 4096   # rows/tile: 4096*128*4B = 2 MiB per input per pipeline buffer
_CHUNK = 512     # rows per inner accumulate step (bounds live VMEM temps)


def _cdiv(a, b):
    return -(-a // b)


def _round_up(x, m):
    return _cdiv(x, m) * m


def _qfocal_kernel(pred_ref, true_ref, out_ref, *,
                   gamma, alpha, tm, chunk, inner, total):
    c = pl.program_id(0)      # "parallel" axis (megacore on v7x)
    i = pl.program_id(1)      # "arbitrary" reduction axis

    # Output block is resident across the reduction axis -> use it as the
    # per-core (8,128) accumulator (private per c, so per TensorCore).
    @pl.when(i == 0)
    def _():
        out_ref[...] = jnp.zeros_like(out_ref)

    bidx = c * inner + i                  # intended global tile index (unclamped)
    row0 = bidx * tm                      # first global row of this tile
    full_rows = total // _LANES           # rows whose 128 lanes are all valid
    rem = total % _LANES                  # valid lanes in row `full_rows`
    n_chunks = tm // chunk

    def chunk_loss(r_local):
        x = pred_ref[pl.ds(r_local, chunk), :].astype(jnp.float32)
        z = true_ref[pl.ds(r_local, chunk), :].astype(jnp.float32)
        # Numerically-stable BCE with logits (matches torch BCEWithLogitsLoss):
        #   max(x, 0) - x*z + log1p(exp(-|x|))
        # Reuse e = exp(-|x|) for the sigmoid: p = 1/(1+e) if x>=0 else 1-1/(1+e).
        e = jnp.exp(-jnp.abs(x))
        bce = jnp.maximum(x, 0.0) - x * z + jnp.log1p(e)
        inv = 1.0 / (1.0 + e)
        p = jnp.where(x >= 0.0, inv, 1.0 - inv)
        # alpha_factor folded to 2 VPU ops: (1-alpha) + z*(2*alpha-1)
        af = (1.0 - alpha) + z * (2.0 * alpha - 1.0)
        d = jnp.abs(z - p)
        if gamma == 1.5:
            mf = d * jnp.sqrt(d)          # d**1.5 without the generic exp/log pow
        else:
            mf = d ** gamma
        return bce * af * mf

    def accumulate(loss):
        # Pure-VPU partial reduce into the vreg-shaped accumulator; the single
        # cross-lane/sublane (XLU) reduce is done once in the wrapper.
        out_ref[...] += loss.reshape(chunk // _SUBLANES, _SUBLANES, _LANES).sum(axis=0)

    tile_is_full = (row0 + tm) <= full_rows

    # Steady-state path: every element of this tile is valid -> no mask work.
    @pl.when(tile_is_full)
    def _():
        def body(ci, carry):
            r_local = pl.multiple_of(ci * chunk, _SUBLANES)
            accumulate(chunk_loss(r_local))
            return carry
        lax.fori_loop(0, n_chunks, body, 0)

    # Boundary path: tile overruns the real data (ragged tile / padded lanes /
    # phantom duplicate block) -> zero the invalid rows/lanes before summing.
    @pl.when(jnp.logical_not(tile_is_full))
    def _():
        def body(ci, carry):
            r_local = pl.multiple_of(ci * chunk, _SUBLANES)
            loss = chunk_loss(r_local)
            r_glob = row0 + r_local + lax.broadcasted_iota(
                jnp.int32, (chunk, _LANES), 0)
            valid = r_glob < full_rows
            if rem:
                lanes = lax.broadcasted_iota(jnp.int32, (chunk, _LANES), 1)
                valid = valid | ((r_glob == full_rows) & (lanes < rem))
            accumulate(jnp.where(valid, loss, 0.0))
            return carry
        lax.fori_loop(0, n_chunks, body, 0)


def qfocal_loss(pred, true, gamma=GAMMA, alpha=ALPHA):
    """Pallas QFocalLoss forward ('mean' reduction).

    pred/true: matching shapes, f32 or bf16 (bf16 is upcast in-register)."""
    assert pred.shape == true.shape
    total = pred.size

    pred_flat = pred.reshape(-1)
    true_flat = true.reshape(-1)

    rem = total % _LANES
    rows2 = _cdiv(total, _LANES)
    if rem:
        # Only the sub-128 remainder is padded so the lane-dense reshape is
        # legal; the padded lanes are masked out in-kernel.
        pad = _LANES - rem
        pred_flat = jnp.pad(pred_flat, (0, pad))
        true_flat = jnp.pad(true_flat, (0, pad))
    pred2 = pred_flat.reshape(rows2, _LANES)
    true2 = true_flat.reshape(rows2, _LANES)

    # Tile size: biggest tile that still leaves one tile per TensorCore
    # (halve rows BEFORE capping), sublane-aligned, and a multiple of the inner
    # chunk so the fori_loop body is uniform.
    tm = min(_MAX_TM, _round_up(_cdiv(rows2, 2), _SUBLANES))
    if tm >= _CHUNK:
        tm = _round_up(tm, _CHUNK)
        chunk = _CHUNK
    else:
        chunk = tm

    n_tiles = _cdiv(rows2, tm)
    n_par = 2 if n_tiles >= 2 else 1       # feed v7x's 2nd TensorCore
    inner = _cdiv(n_tiles, n_par)

    # When n_par*inner > n_tiles there is one phantom grid step; clamp its DMA
    # to the last real block (the in-kernel mask zeroes its contribution).
    if n_par * inner == n_tiles:
        def in_map(c, i):
            return (c * inner + i, 0)
    else:
        def in_map(c, i):
            return (jnp.minimum(c * inner + i, n_tiles - 1), 0)

    kernel = functools.partial(
        _qfocal_kernel, gamma=gamma, alpha=alpha, tm=tm, chunk=chunk,
        inner=inner, total=total)

    partials = pl.pallas_call(
        kernel,
        out_shape=jax.ShapeDtypeStruct((n_par, _SUBLANES, _LANES), jnp.float32),
        grid_spec=pltpu.PrefetchScalarGridSpec(
            num_scalar_prefetch=0,
            grid=(n_par, inner),
            in_specs=[
                pl.BlockSpec((tm, _LANES), in_map),
                pl.BlockSpec((tm, _LANES), in_map),
            ],
            out_specs=pl.BlockSpec((None, _SUBLANES, _LANES),
                                   lambda c, i: (c, 0, 0)),
        ),
        compiler_params=pltpu.CompilerParams(
            dimension_semantics=("parallel", "arbitrary"),
            vmem_limit_bytes=32 * 1024 * 1024),
    )(pred2, true2)

    # Final cross-lane/sublane reduce + 'mean' reduction in the wrapper
    # (tiny lane-dense partial, avoids any sub-(8,128) output block).
    return jnp.sum(partials) * (1.0 / float(total))


def _reference(pred, true, gamma=GAMMA, alpha=ALPHA):
    x = pred.astype(jnp.float32)
    z = true.astype(jnp.float32)
    bce = jnp.maximum(x, 0.0) - x * z + jnp.log1p(jnp.exp(-jnp.abs(x)))
    p = jax.nn.sigmoid(x)
    loss = bce * (z * alpha + (1 - z) * (1 - alpha)) * jnp.abs(z - p) ** gamma
    return jnp.mean(loss)


if __name__ == "__main__":
    key = jax.random.PRNGKey(0)
    k_pred, k_true = jax.random.split(key)
    # NCHW logits and targets, small shapes
    pred = jax.random.normal(k_pred, (2, 4, 16, 16), dtype=jnp.float32)
    true = (jax.random.uniform(k_true, (2, 4, 16, 16)) > 0.7).astype(jnp.float32)

    out = qfocal_loss(pred, true)
    out = jax.block_until_ready(out)

    ref = _reference(pred, true)
    assert jnp.allclose(out, ref, rtol=1e-4, atol=1e-6), (out, ref)

    print("KERNEL_OK")
</pallas_src>

<mosaic_0001>
module attributes {stable_mosaic.version = 11 : i64} {
  func.func @_qfocal_kernel(%arg0: i32, %arg1: i32, %arg2: memref<8x128xf32, #tpu.memory_space<vmem>>, %arg3: memref<8x128xf32, #tpu.memory_space<vmem>>, %arg4: memref<1x8x128xf32, #tpu.memory_space<vmem>>) attributes {dimension_semantics = [#tpu.dimension_semantics<parallel>, #tpu.dimension_semantics<arbitrary>], iteration_bounds = array<i64: 2, 1>, scalar_prefetch = 0 : i64, scratch_operands = 0 : i64, tpu.core_type = #tpu.core_type<tc>, window_params = [{transform_indices = @transform_0, window_bounds = array<i64: 8, 128>}, {transform_indices = @transform_1, window_bounds = array<i64: 8, 128>}, {transform_indices = @transform_2, window_bounds = array<i64: 1, 8, 128>}]} {
    %c0_i32 = arith.constant 0 : i32
    %0 = arith.cmpi eq, %arg1, %c0_i32 : i32
    %1 = arith.extui %0 : i1 to i32
    %c0_i32_0 = arith.constant 0 : i32
    %2 = arith.cmpi ne, %1, %c0_i32_0 : i32
    scf.if %2 {
      %cst = arith.constant 0.000000e+00 : f32
      %13 = vector.broadcast %cst : f32 to vector<8x128xf32>
      %c0 = arith.constant 0 : index
      %c0_4 = arith.constant 0 : index
      %c0_5 = arith.constant 0 : index
      %14 = vector.load %arg4[%c0, %c0_4, %c0_5] : memref<1x8x128xf32, #tpu.memory_space<vmem>>, vector<1x8x128xf32>
      %15 = vector.shape_cast %14 : vector<1x8x128xf32> to vector<8x128xf32>
      %16 = vector.shape_cast %13 : vector<8x128xf32> to vector<1x8x128xf32>
      tpu.vector_store %arg4[%c0, %c0_4, %c0_5], %16 {strides = array<i32>} : memref<1x8x128xf32, #tpu.memory_space<vmem>>, vector<1x8x128xf32>,
    } else {
    }
    %c1_i32 = arith.constant 1 : i32
    %3 = arith.muli %arg0, %c1_i32 : i32
    %4 = arith.addi %3, %arg1 : i32
    %c8_i32 = arith.constant 8 : i32
    %5 = arith.muli %4, %c8_i32 : i32
    %c8_i32_1 = arith.constant 8 : i32
    %6 = arith.addi %5, %c8_i32_1 : i32
    %c16_i32 = arith.constant 16 : i32
    %7 = arith.cmpi sle, %6, %c16_i32 : i32
    %8 = arith.extui %7 : i1 to i32
    %c0_i32_2 = arith.constant 0 : i32
    %9 = arith.cmpi ne, %8, %c0_i32_2 : i32
    scf.if %9 {
      %c0_i32_4 = arith.constant 0 : i32
      %c8_i32_5 = arith.constant 8 : i32
      %13 = arith.muli %c0_i32_4, %c8_i32_5 : i32
      %14 = tpu.assume_multiple %13, 8 : i32
      %15 = arith.index_cast %14 : i32 to index
      %c0 = arith.constant 0 : index
      %16 = vector.load %arg2[%15, %c0] : memref<8x128xf32, #tpu.memory_space<vmem>>, vector<8x128xf32>
      %17 = arith.index_cast %14 : i32 to index
      %c0_6 = arith.constant 0 : index
      %18 = vector.load %arg3[%17, %c0_6] : memref<8x128xf32, #tpu.memory_space<vmem>>, vector<8x128xf32>
      %19 = math.absf %16 : vector<8x128xf32>
      %cst = arith.constant 0.000000e+00 : f32
      %20 = vector.broadcast %cst : f32 to vector<8x128xf32>
      %21 = arith.subf %20, %19 : vector<8x128xf32>
      %22 = math.exp %21 : vector<8x128xf32>
      %cst_7 = arith.constant 0.000000e+00 : f32
      %23 = vector.broadcast %cst_7 : f32 to vector<8x128xf32>
      %24 = arith.maximumf %16, %23 : vector<8x128xf32>
      %25 = arith.mulf %16, %18 : vector<8x128xf32>
      %26 = arith.subf %24, %25 : vector<8x128xf32>
      %27 = math.log1p %22 : vector<8x128xf32>
      %28 = arith.addf %26, %27 : vector<8x128xf32>
      %cst_8 = arith.constant 1.000000e+00 : f32
      %29 = vector.broadcast %cst_8 : f32 to vector<8x128xf32>
      %30 = arith.addf %29, %22 : vector<8x128xf32>
      %cst_9 = arith.constant 1.000000e+00 : f32
      %31 = vector.broadcast %cst_9 : f32 to vector<8x128xf32>
      %32 = arith.divf %31, %30 : vector<8x128xf32>
      %cst_10 = arith.constant 0.000000e+00 : f32
      %33 = vector.broadcast %cst_10 : f32 to vector<8x128xf32>
      %34 = arith.cmpf oge, %16, %33 : vector<8x128xf32>
      %cst_11 = arith.constant 1.000000e+00 : f32
      %35 = vector.broadcast %cst_11 : f32 to vector<8x128xf32>
      %36 = arith.subf %35, %32 : vector<8x128xf32>
      %37 = arith.select %34, %32, %36 : vector<8x128xi1>, vector<8x128xf32>
      %cst_12 = arith.constant -5.000000e-01 : f32
      %38 = vector.broadcast %cst_12 : f32 to vector<8x128xf32>
      %39 = arith.mulf %18, %38 : vector<8x128xf32>
      %cst_13 = arith.constant 7.500000e-01 : f32
      %40 = vector.broadcast %cst_13 : f32 to vector<8x128xf32>
      %41 = arith.addf %40, %39 : vector<8x128xf32>
      %42 = arith.subf %18, %37 : vector<8x128xf32>
      %43 = math.absf %42 : vector<8x128xf32>
      %44 = math.sqrt %43 : vector<8x128xf32>
      %45 = arith.mulf %43, %44 : vector<8x128xf32>
      %46 = arith.mulf %28, %41 : vector<8x128xf32>
      %47 = arith.mulf %46, %45 : vector<8x128xf32>
      %c0_14 = arith.constant 0 : index
      %c0_15 = arith.constant 0 : index
      %c0_16 = arith.constant 0 : index
      %48 = vector.load %arg4[%c0_14, %c0_15, %c0_16] : memref<1x8x128xf32, #tpu.memory_space<vmem>>, vector<1x8x128xf32>
      %49 = vector.shape_cast %48 : vector<1x8x128xf32> to vector<8x128xf32>
      %50 = vector.shape_cast %47 : vector<8x128xf32> to vector<1x8x128xf32>
      %cst_17 = arith.constant dense<0.000000e+00> : vector<8x128xf32>
      %51 = vector.multi_reduction <add>, %50, %cst_17 [0] : vector<1x8x128xf32> to vector<8x128xf32>
      %52 = arith.addf %49, %51 : vector<8x128xf32>
      %c0_18 = arith.constant 0 : index
      %c0_19 = arith.constant 0 : index
      %c0_20 = arith.constant 0 : index
      %53 = vector.load %arg4[%c0_18, %c0_19, %c0_20] : memref<1x8x128xf32, #tpu.memory_space<vmem>>, vector<1x8x128xf32>
      %54 = vector.shape_cast %53 : vector<1x8x128xf32> to vector<8x128xf32>
      %55 = vector.shape_cast %52 : vector<8x128xf32> to vector<1x8x128xf32>
      tpu.vector_store %arg4[%c0_18, %c0_19, %c0_20], %55 {strides = array<i32>} : memref<1x8x128xf32, #tpu.memory_space<vmem>>, vector<1x8x128xf32>,
      %c1_i32_21 = arith.constant 1 : i32
    } else {
    }
    %true = arith.constant true
    %10 = arith.xori %7, %true : i1
    %11 = arith.extui %10 : i1 to i32
    %c0_i32_3 = arith.constant 0 : i32
    %12 = arith.cmpi ne, %11, %c0_i32_3 : i32
    scf.if %12 {
      %c0_i32_4 = arith.constant 0 : i32
      %c8_i32_5 = arith.constant 8 : i32
      %13 = arith.muli %c0_i32_4, %c8_i32_5 : i32
      %14 = tpu.assume_multiple %13, 8 : i32
      %15 = arith.index_cast %14 : i32 to index
      %c0 = arith.constant 0 : index
      %16 = vector.load %arg2[%15, %c0] : memref<8x128xf32, #tpu.memory_space<vmem>>, vector<8x128xf32>
      %17 = arith.index_cast %14 : i32 to index
      %c0_6 = arith.constant 0 : index
      %18 = vector.load %arg3[%17, %c0_6] : memref<8x128xf32, #tpu.memory_space<vmem>>, vector<8x128xf32>
      %19 = math.absf %16 : vector<8x128xf32>
      %cst = arith.constant 0.000000e+00 : f32
      %20 = vector.broadcast %cst : f32 to vector<8x128xf32>
      %21 = arith.subf %20, %19 : vector<8x128xf32>
      %22 = math.exp %21 : vector<8x128xf32>
      %cst_7 = arith.constant 0.000000e+00 : f32
      %23 = vector.broadcast %cst_7 : f32 to vector<8x128xf32>
      %24 = arith.maximumf %16, %23 : vector<8x128xf32>
      %25 = arith.mulf %16, %18 : vector<8x128xf32>
      %26 = arith.subf %24, %25 : vector<8x128xf32>
      %27 = math.log1p %22 : vector<8x128xf32>
      %28 = arith.addf %26, %27 : vector<8x128xf32>
      %cst_8 = arith.constant 1.000000e+00 : f32
      %29 = vector.broadcast %cst_8 : f32 to vector<8x128xf32>
      %30 = arith.addf %29, %22 : vector<8x128xf32>
      %cst_9 = arith.constant 1.000000e+00 : f32
      %31 = vector.broadcast %cst_9 : f32 to vector<8x128xf32>
      %32 = arith.divf %31, %30 : vector<8x128xf32>
      %cst_10 = arith.constant 0.000000e+00 : f32
      %33 = vector.broadcast %cst_10 : f32 to vector<8x128xf32>
      %34 = arith.cmpf oge, %16, %33 : vector<8x128xf32>
      %cst_11 = arith.constant 1.000000e+00 : f32
      %35 = vector.broadcast %cst_11 : f32 to vector<8x128xf32>
      %36 = arith.subf %35, %32 : vector<8x128xf32>
      %37 = arith.select %34, %32, %36 : vector<8x128xi1>, vector<8x128xf32>
      %cst_12 = arith.constant -5.000000e-01 : f32
      %38 = vector.broadcast %cst_12 : f32 to vector<8x128xf32>
      %39 = arith.mulf %18, %38 : vector<8x128xf32>
      %cst_13 = arith.constant 7.500000e-01 : f32
      %40 = vector.broadcast %cst_13 : f32 to vector<8x128xf32>
      %41 = arith.addf %40, %39 : vector<8x128xf32>
      %42 = arith.subf %18, %37 : vector<8x128xf32>
      %43 = math.absf %42 : vector<8x128xf32>
      %44 = math.sqrt %43 : vector<8x128xf32>
      %45 = arith.mulf %43, %44 : vector<8x128xf32>
      %46 = arith.mulf %28, %41 : vector<8x128xf32>
      %47 = arith.mulf %46, %45 : vector<8x128xf32>
      %48 = arith.addi %5, %14 : i32
      %49 = tpu.iota {dimensions = array<i32: 0>} : vector<8x128xi32>
      %50 = vector.broadcast %48 : i32 to vector<8x128xi32>
      %51 = arith.addi %50, %49 : vector<8x128xi32>
      %c16_i32_14 = arith.constant 16 : i32
      %52 = vector.broadcast %c16_i32_14 : i32 to vector<8x128xi32>
      %53 = arith.cmpi slt, %51, %52 : vector<8x128xi32>
      %cst_15 = arith.constant 0.000000e+00 : f32
      %54 = vector.broadcast %cst_15 : f32 to vector<8x128xf32>
      %55 = arith.select %53, %47, %54 : vector<8x128xi1>, vector<8x128xf32>
      %c0_16 = arith.constant 0 : index
      %c0_17 = arith.constant 0 : index
      %c0_18 = arith.constant 0 : index
      %56 = vector.load %arg4[%c0_16, %c0_17, %c0_18] : memref<1x8x128xf32, #tpu.memory_space<vmem>>, vector<1x8x128xf32>
      %57 = vector.shape_cast %56 : vector<1x8x128xf32> to vector<8x128xf32>
      %58 = vector.shape_cast %55 : vector<8x128xf32> to vector<1x8x128xf32>
      %cst_19 = arith.constant dense<0.000000e+00> : vector<8x128xf32>
      %59 = vector.multi_reduction <add>, %58, %cst_19 [0] : vector<1x8x128xf32> to vector<8x128xf32>
      %60 = arith.addf %57, %59 : vector<8x128xf32>
      %c0_20 = arith.constant 0 : index
      %c0_21 = arith.constant 0 : index
      %c0_22 = arith.constant 0 : index
      %61 = vector.load %arg4[%c0_20, %c0_21, %c0_22] : memref<1x8x128xf32, #tpu.memory_space<vmem>>, vector<1x8x128xf32>
      %62 = vector.shape_cast %61 : vector<1x8x128xf32> to vector<8x128xf32>
      %63 = vector.shape_cast %60 : vector<8x128xf32> to vector<1x8x128xf32>
      tpu.vector_store %arg4[%c0_20, %c0_21, %c0_22], %63 {strides = array<i32>} : memref<1x8x128xf32, #tpu.memory_space<vmem>>, vector<1x8x128xf32>,
      %c1_i32_23 = arith.constant 1 : i32
    } else {
    }
    return
  }
  func.func @transform_0(%arg0: i32, %arg1: i32) -> (i32, i32) {
    %c1_i32 = arith.constant 1 : i32
    %0 = arith.muli %arg0, %c1_i32 : i32
    %1 = arith.addi %0, %arg1 : i32
    %c0_i32 = arith.constant 0 : i32
    %c0_i32_0 = arith.constant 0 : i32
    return %1, %c0_i32 : i32, i32
  }
  func.func @transform_1(%arg0: i32, %arg1: i32) -> (i32, i32) {
    %c1_i32 = arith.constant 1 : i32
    %0 = arith.muli %arg0, %c1_i32 : i32
    %1 = arith.addi %0, %arg1 : i32
    %c0_i32 = arith.constant 0 : i32
    %c0_i32_0 = arith.constant 0 : i32
    return %1, %c0_i32 : i32, i32
  }
  func.func @transform_2(%arg0: i32, %arg1: i32) -> (i32, i32, i32) {
    %c0_i32 = arith.constant 0 : i32
    %c0_i32_0 = arith.constant 0 : i32
    %c0_i32_1 = arith.constant 0 : i32
    return %arg0, %c0_i32, %c0_i32_0 : i32, i32, i32
  }
}

</mosaic_0001>

<bundles_post_ra>
// kernel: tpu_custom_call.1
= control target key start
LH: loop header
LB: loop body
LE: loop exit
PB: predicated region body
PF: predicated region fallthrough
CT: control target
= control target key end

     0   :  { %7 = vsyncpa [#allocation3], 0  ;;  %s956_s0 = inlined_call_operand.hbm [shape: f32[16,128], index: 0, kind: input, shape index: {}]   ;;  %s957_s1 = inlined_call_operand.hbm [shape: f32[16,128], index: 1, kind: input, shape index: {}]   ;;  %s958_s2 = inlined_call_operand.hbm [shape: f32[2,8,128], index: 2, kind: output, shape index: {}]  }
   0x1   :  { %9 = vsyncpa [#allocation3 + $0x1], 0 }
   0x2   :  { %10 = vsyncpa [#allocation6], 0 }
   0x3   :  { %12 = vsyncpa [#allocation6 + $0x1], 0 }
   0x4   :  { %13 = vsyncpa [#allocation4], 0 }
   0x5   :  { %15 = vsyncpa [#allocation4 + $0x1], 0  ;;  %s712_s9 = smov 0   ;;  %s714_s10 = smov 0  }
   0x6   :  { %s716_s11 = smov 0   ;;  %s718_s12 = smov 0  }
   0x7   :  { %s720_s13 = smov 0   ;;  %s722_s14 = smov 0  }
   0x8 LB: > { %s442_s15 = sadd.s32 4294967295, %s691_s14   ;;  %s443_s16 = sadd.s32 4294967294, %s691_s14   ;;  %s691_s14 = sphi %s722_s14, %s21_s14   ;;  %s687_s13 = sphi %s720_s13, %s978_s13   ;;  %s683_s12 = sphi %s718_s12, %s977_s12   ;;  %s679_s11 = sphi %s716_s11, %s976_s11   ;;  %s675_s10 = sphi %s714_s10, %s975_s10   ;;  %s671_s9 = sphi %s712_s9, %s974_s9  }
   0x9   : > { %s33_s17 = sadd.s32 1, %s687_s13  ;;  %s42_s18 = sadd.s32 1, %s679_s11 }
   0xa   : > { %p35_p0 = scmp.ge.s32.totalorder %s33_s17, 2  ;;  %p49_p1 = scmp.ne.s32.totalorder %s679_s11, %s675_s10 }
   0xb   : > { %p50_p2 = scmp.eq.s32.totalorder %s691_s14, 0  ;;  %p55_p3 = scmp.ne.s32.totalorder %s675_s10, %s671_s9 }
   0xc   : > { %s980_s17 = smov (%p35_p0, %s33_s17), 0  ;;  %p56_p5 = scmp.eq.s32.totalorder %s442_s15, 0 }
   0xd   : > { %p753_p4 = por %p50_p2, %p49_p1  ;;  %s39_s20 = ssub.s32 %s687_s13, %s980_s17 }
   0xe   : > { %p107_p6 = scmp.eq.s32.totalorder %s442_s15, 1  ;;  %p40_p7 = scmp.eq.s32.totalorder %s39_s20, 0 }
   0xf   : > { %p759_p8 = por %p56_p5, %p55_p3  ;;  %p113_p10 = scmp.eq.s32.totalorder %s443_s16, 1 }
  0x10   : > { %p763_p9 = por %p107_p6, %p49_p1  ;;  %p478_p13 = scmp.lt.s32.totalorder %s691_s14, 2 }
  0x11   : > { %s962_s21 = scalar_select %p759_p8, 1, 0 }
  0x12   : > { %s963_s22 = scalar_select %p763_p9, 1, 0 }
  0x13   : > { %s768_s23 = scalar_select %p40_p7, %s679_s11, %s42_s18  }
  0x14   : > { %p770_p11 = por %p113_p10, %p55_p3  ;;  %s777_s25 = sand.u32 1, %s679_s11  }
  0x15   : > { %s446_s26 = sshll.u32 %s777_s25, 3  ;;  %s447_s27 = sshll.u32 %s687_s13, 7 }
  0x16   : > { %s964_s24 = scalar_select %p770_p11, 1, 0 }
  0x17   : > { %s786_s30 = scalar_lea.hbm %s956_s0, %s447_s27  ;;  %s137_s3 = scalar_lea.vmem [#allocation2], %s446_s26 }
  0x18   : > { %s145_s4 = sshll.u32 %s137_s3, 4  ;;  %p794_p0 = pnand %p478_p13, %p753_p4  ;;  %s790_s4 = int_to_ptr.vmem [resolvable:$true] %s145_s4 }
  0x19   : > { %s134_s6 = scalar_lea.sflag [#allocation3], %s777_s25  ;;  %s545_s7 = scalar_lea.hbm %s786_s30, 128 }
  0x1a   : > { %p546_p3 = scmp.ne.s32.totalorder %s786_s30, %s545_s7  ;;  %p547_p5 = pneg %p794_p0 }
  0x1b   : > { %s550_s16 = scalar_lea.hbm %s956_s0, 256  ;;  %p551_p4 = scmp.lt.u32.totalorder %s786_s30, %s956_s0 }
  0x1c   : > { %p548_p6 = pnand %p547_p5, %p546_p3  ;;  %p552_p10 = scmp.lt.u32.totalorder %s550_s16, %s545_s7 }
  0x1d   : > { %p554_p12 = scmp.lt.u32.totalorder %s545_s7, %s786_s30 }
  0x1e   : > { %p549_p7 = pneg %p548_p6  ;;  %p553_p13 = por %p552_p10, %p551_p4 }
  0x20   : > { %p555_p1 = por %p554_p12, %p553_p13 }
  0x22   : > { %p556_p2 = pnand %p555_p1, %p549_p7 }
  0x24   : > { %559 = shalt.err (!%p556_p2)
}
  0x25   : > { %s560_s20 = scalar_lea.vmem %s790_s4, 128  ;;  %s693_s28 = smov [#allocation2]  }
  0x26   : > { %p561_p3 = scmp.ne.s32.totalorder %s790_s4, %s560_s20  ;;  %s565_s29 = sshll.u32 %s693_s28, 4  ;;  %s566_s29 = int_to_ptr.vmem [resolvable:$false] %s565_s29 }
  0x27   : > { %s567_s3 = scalar_lea.vmem %s566_s29, 256  ;;  %p568_p9 = scmp.lt.s32.totalorder %s790_s4, %s566_s29 }
  0x28   : > { %p563_p6 = pnand %p561_p3, %p547_p5  ;;  %p569_p4 = scmp.lt.s32.totalorder %s567_s3, %s560_s20 }
  0x2a   : > { %p564_p11 = pneg %p563_p6  ;;  %p570_p10 = por %p569_p4, %p568_p9 }
  0x2c   : > { %p571_p12 = pnand %p570_p10, %p564_p11 }
  0x2e   : > { %574 = shalt.err (!%p571_p12)
}
  0x2f   : > { %470 = dma.hbm_to_vmem [thread:$0]  (!%p794_p0), %s786_s30, 128, %s790_s4, %s134_s6  }
  0x30   : > { %p966_p1 = scmp.lt.s32.totalorder %s691_s14, 3  ;;  %p967_p2 = scmp.ge.s32.totalorder %s691_s14, 1 }
  0x31   : > { %s839_s16 = scalar_lea.hbm %s957_s1, %s447_s27  ;;  %s156_s18 = scalar_lea.vmem [#allocation5], %s446_s26 }
  0x32   : > { %p830_p7 = pnand %p967_p2, %p966_p1  ;;  %s164_s19 = sshll.u32 %s156_s18, 4  ;;  %s165_s19 = int_to_ptr.vmem [resolvable:$true] %s164_s19 }
  0x33   : > { %s153_s30 = scalar_lea.sflag [#allocation6], %s777_s25  ;;  %s575_s4 = scalar_lea.hbm %s839_s16, 128 }
  0x34   : > { %s968_s7 = scalar_select %p830_p7, 1, 0 }
  0x35   : > { %p576_p9 = scmp.ne.s32.totalorder %s839_s16, %s575_s4  ;;  %s580_s27 = scalar_lea.hbm %s957_s1, 256 }
  0x36   : > { %p581_p3 = scmp.lt.u32.totalorder %s839_s16, %s957_s1  ;;  %p582_p6 = scmp.lt.u32.totalorder %s580_s27, %s575_s4 }
  0x37   : > { %p578_p11 = pnand %p576_p9, %p547_p5  ;;  %p584_p10 = scmp.lt.u32.totalorder %s575_s4, %s839_s16 }
  0x38   : > { %p583_p4 = por %p582_p6, %p581_p3 }
  0x39   : > { %p579_p13 = pneg %p578_p11 }
  0x3a   : > { %p585_p12 = por %p584_p10, %p583_p4 }
  0x3c   : > { %p586_p1 = pnand %p585_p12, %p579_p13 }
  0x3e   : > { %589 = shalt.err (!%p586_p1)
}
  0x3f   : > { %s590_s25 = scalar_lea.vmem %s165_s19, 128  ;;  %s694_s26 = smov [#allocation5]  }
  0x40   : > { %p591_p2 = scmp.ne.s32.totalorder %s165_s19, %s590_s25  ;;  %s595_s3 = sshll.u32 %s694_s26, 4  ;;  %s596_s3 = int_to_ptr.vmem [resolvable:$false] %s595_s3 }
  0x41   : > { %s597_s8 = scalar_lea.vmem %s596_s3, 256  ;;  %p598_p8 = scmp.lt.s32.totalorder %s165_s19, %s596_s3 }
  0x42   : > { %p593_p9 = pnand %p591_p2, %p547_p5  ;;  %p599_p7 = scmp.lt.s32.totalorder %s597_s8, %s590_s25 }
  0x44   : > { %p594_p11 = pneg %p593_p9  ;;  %p600_p3 = por %p599_p7, %p598_p8 }
  0x46   : > { %p601_p6 = pnand %p600_p3, %p594_p11 }
  0x48   : > { %604 = shalt.err (!%p601_p6)
}
  0x49   : > { %473 = dma.hbm_to_vmem [thread:$0]  (!%p794_p0), %s839_s16, 128, %s165_s19, %s153_s30  }
  0x4a   : > { %p969_p13 = scmp.ne.s32.totalorder %s968_s7, 0 }
  0x4b   : > { %s866_s15 = sand.u32 (!%p969_p13), 1, %s675_s10   ;;  %p970_p8 = scmp.ne.s32.totalorder (!%p969_p13), %s962_s21, 0 }
  0x4c   : > { %173 = sbr.rel (%p969_p13) target bundleno = 236 (0xec), region = 28  ;;  %s869_s18 = sshll.u32 (!%p969_p13), %s866_s15, 3 }
  0x4d   : > { %s176_s4 = scalar_lea.sflag (!%p969_p13), [#allocation3], %s866_s15  ;;  %s179_s6 = scalar_lea.vmem (!%p969_p13), [#allocation2], %s869_s18 }
  0x53   : > { %658 = dma.done.wait (%p970_p8), %s176_s4, 128  }
  0x54   : > { %660 = vsyncadd (%p970_p8), %s176_s4, 4294967168  ;;  %s185_s5 = scalar_lea.sflag [#allocation6], %s866_s15  ;;  %s188_s7 = scalar_lea.vmem [#allocation5], %s869_s18 }
  0x55   : > { %662 = dma.done.wait (%p970_p8), %s185_s5, 128  }
  0x56   : > { %664 = vsyncadd (%p970_p8), %s185_s5, 4294967168  ;;  %s454_s16 = sshll.u32 %s683_s12, 3  ;;  %s885_s19 = scalar_lea.vmem [#allocation7], %s869_s18  ;;  %v695_v0 = vmov 0.0  }
  0x57   : > { %220 = vst [vmem:[%s885_s19] sm:$0xff] %v695_v0  ;;  %s890_s30 = sadd.s32 8, %s454_s16 }
  0x58   : > { %p455_p0 = scmp.gt.s32.totalorder %s890_s30, 16 }
  0x59   : > { %v228_v1 = vld [vmem:[%s179_s6] sm:$0xff] (!%p455_p0)  ;;  %v229_v8 = vld [vmem:[%s188_s7] sm:$0xff] (!%p455_p0) }
  0x5a   : > { %227 = sbr.rel (%p455_p0) target bundleno = 149 (0x95), region = 44  ;;  %v230_v2 = vand.u32 (!%p455_p0), 2147483647, %v228_v1  ;;  %vm250_vm0 = vcmp.ge.f32.partialorder (!%p455_p0), %v228_v1, 0.0  ;;  %v234_v17 = vmax.f32 (!%p455_p0), %v228_v1, 0.0  ;;  %v235_v18 = vmul.f32 (!%p455_p0), %v229_v8, %v228_v1 }
  0x5b   : > { %v253_v22 = vmul.f32 (!%p455_p0), -0.5, %v229_v8 }
  0x5c   : > { %v231_v3 = vsub.f32 (!%p455_p0), 0.0, %v230_v2  ;;  %v236_v21 = vsub.f32 (!%p455_p0), %v234_v17, %v235_v18 }
  0x5d   : > { %v254_v25 = vadd.f32 (!%p455_p0), 0.75, %v253_v22 }
  0x5e   : > { %v232_v4 = vmul.f32 (!%p455_p0), 1.442695, %v231_v3  ;;  %v267_v33 = vld [vmem:[%s885_s19] sm:$0xff] (!%p455_p0) }
  0x60   : > { %529 = vpow2.f32 (!%p455_p0), %v232_v4 }
  0x6a   : > { %v530_v5 = vpop.eup %529 }
  0x6b   : > { %v237_v6 = vadd.f32 1.0, %v530_v5  ;;  %v240_v10 = vmul.f32 -0.5, %v530_v5  ;;  %v243_v16 = vand.u32 2147483647, %v530_v5 }
  0x6d   : > { %531 = vrcp.f32 %v237_v6  ;;  %v241_v13 = vadd.f32 1.0, %v240_v10  ;;  %vm244_vm1 = vcmp.lt.f32.partialorder %v243_v16, 0.0004427343 }
  0x6e   : > { %533 = vlog2.f32 %v237_v6 }
  0x6f   : > { %v242_v20 = vmul.f32 %v530_v5, %v241_v13 }
  0x77   : > { %v532_v7 = vpop.eup %531 }
  0x78   : > { %v251_v9 = vsub.f32 1.0, %v532_v7  ;;  %v534_v15 = vpop.eup %533 }
  0x79   : > { %v239_v19 = vmul.f32 0.6931472, %v534_v15 }
  0x7a   : > { %v252_v11 = vsel %vm250_vm0, %v532_v7, %v251_v9 }
  0x7b   : > { %v255_v12 = vsub.f32 %v229_v8, %v252_v11  ;;  %v245_v23 = vsel %vm244_vm1, %v242_v20, %v239_v19 }
  0x7c   : > { %v246_v24 = vadd.f32 %v245_v23, %v236_v21 }
  0x7d   : > { %v256_v14 = vand.u32 2147483647, %v255_v12 }
  0x7e   : > { %v265_v30 = vmul.f32 %v254_v25, %v246_v24 }
  0x7f   : > { %535 = vrsqrt.f32 %v256_v14  ;;  %vm259_vm2 = vcmp.eq.f32.partialorder %v256_v14, inf  ;;  %v262_v27 = vand.u32 2147483648, %v256_v14  ;;  %vm261_vm3 = vcmp.eq.f32.partialorder %v256_v14, 0.0 }
  0x89   : > { %v536_v26 = vpop.eup %535 }
  0x8a   : > { %v258_v28 = vmul.f32 %v536_v26, %v256_v14 }
  0x8c   : > { %v260_v29 = vsel %vm259_vm2, %v256_v14, %v258_v28 }
  0x8d   : > { %v263_v31 = vsel %vm261_vm3, %v262_v27, %v260_v29 }
  0x8e   : > { %v264_v32 = vmul.f32 %v263_v31, %v256_v14 }
  0x90   : > { %v266_v34 = vmul.f32 %v265_v30, %v264_v32 }
  0x92   : > { %v269_v35 = vadd.f32 %v267_v33, %v266_v34 }
  0x94   : > { %270 = vst [vmem:[%s885_s19] sm:$0xff] %v269_v35 }
  0x95 PF: > { %p456_p5 = scmp.le.s32.totalorder %s890_s30, 16 }
  0x96   : > { %v275_v36 = vld [vmem:[%s179_s6] sm:$0xff] (!%p456_p5)  ;;  %v276_v43 = vld [vmem:[%s188_s7] sm:$0xff] (!%p456_p5)  ;;  %v315_v56 = vlaneseq (!%p456_p5)  ;;  %v317_v63 = vstv (!%p456_p5), %s454_s16 }
  0x97   : > { %274 = sbr.rel (%p456_p5) target bundleno = 211 (0xd3), region = 48  ;;  %v277_v37 = vand.u32 (!%p456_p5), 2147483647, %v275_v36  ;;  %vm297_vm4 = vcmp.ge.f32.partialorder (!%p456_p5), %v275_v36, 0.0  ;;  %v281_v52 = vmax.f32 (!%p456_p5), %v275_v36, 0.0  ;;  %v282_v53 = vmul.f32 (!%p456_p5), %v276_v43, %v275_v36 }
  0x98   : > { %v300_v58 = vmul.f32 (!%p456_p5), -0.5, %v276_v43  ;;  %v316_v60 = vshrl.u32 (!%p456_p5), %v315_v56, 7 }
  0x99   : > { %v278_v38 = vsub.f32 (!%p456_p5), 0.0, %v277_v37  ;;  %v283_v57 = vsub.f32 (!%p456_p5), %v281_v52, %v282_v53 }
  0x9a   : > { %v301_v62 = vadd.f32 (!%p456_p5), 0.75, %v300_v58  ;;  %v318_v3 = vadd.s32 (!%p456_p5), %v317_v63, %v316_v60 }
  0x9b   : > { %v279_v39 = vmul.f32 (!%p456_p5), 1.442695, %v278_v38  ;;  %v321_v9 = vld [vmem:[%s885_s19] sm:$0xff] (!%p456_p5) }
  0x9c   : > { %vm319_vm8 = vcmp.lt.s32.totalorder (!%p456_p5), %v318_v3, 16 }
  0x9d   : > { %537 = vpow2.f32 (!%p456_p5), %v279_v39 }
  0xa7   : > { %v538_v40 = vpop.eup %537 }
  0xa8   : > { %v284_v41 = vadd.f32 1.0, %v538_v40  ;;  %v287_v45 = vmul.f32 -0.5, %v538_v40  ;;  %v290_v51 = vand.u32 2147483647, %v538_v40 }
  0xaa   : > { %539 = vrcp.f32 %v284_v41  ;;  %v288_v48 = vadd.f32 1.0, %v287_v45  ;;  %vm291_vm5 = vcmp.lt.f32.partialorder %v290_v51, 0.0004427343 }
  0xab   : > { %541 = vlog2.f32 %v284_v41 }
  0xac   : > { %v289_v55 = vmul.f32 %v538_v40, %v288_v48 }
  0xb4   : > { %v540_v42 = vpop.eup %539 }
  0xb5   : > { %v298_v44 = vsub.f32 1.0, %v540_v42  ;;  %v542_v50 = vpop.eup %541 }
  0xb6   : > { %v286_v54 = vmul.f32 0.6931472, %v542_v50 }
  0xb7   : > { %v299_v46 = vsel %vm297_vm4, %v540_v42, %v298_v44 }
  0xb8   : > { %v302_v47 = vsub.f32 %v276_v43, %v299_v46  ;;  %v292_v59 = vsel %vm291_vm5, %v289_v55, %v286_v54 }
  0xb9   : > { %v293_v61 = vadd.f32 %v292_v59, %v283_v57 }
  0xba   : > { %v303_v49 = vand.u32 2147483647, %v302_v47 }
  0xbb   : > { %v312_v5 = vmul.f32 %v301_v62, %v293_v61 }
  0xbc   : > { %543 = vrsqrt.f32 %v303_v49  ;;  %vm306_vm6 = vcmp.eq.f32.partialorder %v303_v49, inf  ;;  %v309_v1 = vand.u32 2147483648, %v303_v49  ;;  %vm308_vm7 = vcmp.eq.f32.partialorder %v303_v49, 0.0 }
  0xc6   : > { %v544_v0 = vpop.eup %543 }
  0xc7   : > { %v305_v2 = vmul.f32 %v544_v0, %v303_v49 }
  0xc9   : > { %v307_v4 = vsel %vm306_vm6, %v303_v49, %v305_v2 }
  0xca   : > { %v310_v6 = vsel %vm308_vm7, %v309_v1, %v307_v4 }
  0xcb   : > { %v311_v7 = vmul.f32 %v310_v6, %v303_v49 }
  0xcd   : > { %v313_v8 = vmul.f32 %v312_v5, %v311_v7 }
  0xcf   : > { %v320_v10 = vsel %vm319_vm8, %v313_v8, 0.0 }
  0xd0   : > { %v323_v11 = vadd.f32 %v321_v9, %v320_v10 }
  0xd2   : > { %324 = vst [vmem:[%s885_s19] sm:$0xff] %v323_v11 }
  0xd3 PF: > { %s458_s21 = sshll.u32 %s683_s12, 7  ;;  %s339_s29 = sshll.u32 %s885_s19, 4  ;;  %s340_s29 = int_to_ptr.vmem [resolvable:$true] %s339_s29 }
  0xd4   : > { %s912_s28 = scalar_lea.hbm %s958_s2, %s458_s21  ;;  %s326_s25 = scalar_lea.sflag [#allocation4], %s866_s15 }
  0xd5   : > { %s605_s26 = scalar_lea.vmem %s340_s29, 128  ;;  %p971_p4 = scmp.ne.s32.totalorder %s963_s22, 0 }
  0xd6   : > { %p606_p7 = scmp.ne.s32.totalorder %s340_s29, %s605_s26  ;;  %s696_s3 = smov [#allocation7]  }
  0xd7   : > { %s609_s8 = sshll.u32 %s696_s3, 4  ;;  %s610_s8 = int_to_ptr.vmem [resolvable:$false] %s609_s8 }
  0xd8   : > { %p607_p10 = pnand %p606_p7, %p971_p4  ;;  %s611_s18 = scalar_lea.vmem %s610_s8, 256 }
  0xd9   : > { %p612_p1 = scmp.lt.s32.totalorder %s340_s29, %s610_s8  ;;  %p613_p2 = scmp.lt.s32.totalorder %s611_s18, %s605_s26 }
  0xda   : > { %p608_p12 = pneg %p607_p10 }
  0xdb   : > { %p614_p9 = por %p613_p2, %p612_p1 }
  0xdd   : > { %p615_p11 = pnand %p614_p9, %p608_p12 }
  0xdf   : > { %618 = shalt.err (!%p615_p11)
}
  0xe0   : > { %s619_s12 = scalar_lea.hbm %s912_s28, 128  ;;  %s623_s6 = scalar_lea.hbm %s958_s2, 256 }
  0xe1   : > { %p620_p3 = scmp.ne.s32.totalorder %s912_s28, %s619_s12  ;;  %p624_p8 = scmp.lt.u32.totalorder %s912_s28, %s958_s2 }
  0xe2   : > { %p625_p0 = scmp.lt.u32.totalorder %s623_s6, %s619_s12  ;;  %p627_p7 = scmp.lt.u32.totalorder %s619_s12, %s912_s28 }
  0xe3   : > { %p621_p6 = pnand %p620_p3, %p971_p4 }
  0xe4   : > { %p626_p5 = por %p625_p0, %p624_p8 }
  0xe5   : > { %p622_p13 = pneg %p621_p6 }
  0xe6   : > { %p628_p10 = por %p627_p7, %p626_p5 }
  0xe8   : > { %p629_p12 = pnand %p628_p10, %p622_p13 }
  0xea   : > { %632 = shalt.err (!%p629_p12)
}
  0xeb   : > { %465 = dma.vmem_to_hbm [thread:$0]  (%p971_p4), %s340_s29, 128, %s912_s28, %s326_s25  }
  0xec PF: > { %s351_s16 = sand.u32 1, %s671_s9   ;;  %p972_p1 = scmp.ne.s32.totalorder %s964_s24, 0 }
  0xed   : > { %p973_p2 = scmp.ge.s32.totalorder %s691_s14, 2  ;;  %s352_s19 = scalar_lea.sflag [#allocation4], %s351_s16 }
  0xef   : > { %p475_p9 = pnand %p973_p2, %p972_p1 }
  0xf1   : > { %666 = dma.done.wait (!%p475_p9), %s352_s19, 128  }
  0xf2   : > { %668 = vsyncadd (!%p475_p9), %s352_s19, 4294967168  ;;  %s21_s14 = sadd.s32 1, %s691_s14   ;;  %s974_s9 = smov %s675_s10 }
  0xf3   : > { %p18_p11 = scmp.ge.s32.totalorder %s21_s14, 4   ;;  %s975_s10 = smov %s679_s11 }
  0xf4   : > { %s976_s11 = smov %s768_s23  ;;  %s977_s12 = smov %s687_s13 }
  0xf5   : > { %s978_s13 = smov %s980_s17  ;;  %20 = sbr.rel (!%p18_p11) target bundleno = 8 (0x8), region = 98 }
  0xfc   :  { %357 = vsyncpa [#allocation3], 1 }
  0xfd   :  { %359 = vsyncpa [#allocation3 + $0x1], 1 }
  0xfe   :  { %360 = vsyncpa [#allocation6], 1 }
  0xff   :  { %362 = vsyncpa [#allocation6 + $0x1], 1 }
 0x100   :  { %363 = vsyncpa [#allocation4], 1 }
 0x101   :  { %365 = vsyncpa [#allocation4 + $0x1], 1 }

</bundles_post_ra>
